<compile_context>
chip_gen: v6e
topology: v6e:2x2x1
jax: 0.10.0
libtpu: 0.0.40
codegen_flags: <defaults>
</compile_context>

<pallas_src>
import functools

import jax
import jax.numpy as jnp
from jax.experimental import pallas as pl
from jax.experimental.pallas import tpu as pltpu

LANES = 128                 # vreg lane width
SUBLANES = 8                # vreg sublane count (f32)
TARGET_BLOCK_ROWS = 2048    # 2048 x 128 x 4B = 1 MiB per f32 input block


def _pow_static(base, gamma):
    """(1-pt)**gamma with integer gamma lowered to a multiply chain (no EUP pow)."""
    g = float(gamma)
    if g.is_integer() and g >= 0:
        gi = int(g)
        if gi == 0:
            return jnp.ones_like(base)
        r = base
        for _ in range(gi - 1):
            r = r * base
        return r
    return base ** g


def _bce_elementwise(x, t):
    # Numerically-stable BCE with logits (valid for arbitrary float targets):
    #   max(x,0) - x*t + log1p(exp(-|x|))
    return jnp.maximum(x, 0.0) - x * t + jnp.log1p(jnp.exp(-jnp.abs(x)))


def _row_align(*dtypes):
    """Sublane multiple required so (rows, 128) blocks tile cleanly per dtype."""
    align = SUBLANES
    for dt in dtypes:
        itemsize = jnp.dtype(dt).itemsize
        align = max(align, SUBLANES * max(1, 4 // itemsize))
    return align


def _focal_reduce_kernel(x_ref, t_ref, out_ref, *, gamma, block_rows,
                         tail_index, tail_remaining):
    """Per block: BCE + focal terms, fold to four (8,128) partial slabs.

    out_ref block shape: (1, 4, 8, 128)
      [0,0] partial sum of focal over targets == 1   (unscaled by alpha)
      [0,1] partial count of targets == 1
      [0,2] partial sum of focal over targets == 0
      [0,3] partial count of targets == 0
    """
    x = x_ref[...].astype(jnp.float32)
    t = t_ref[...].astype(jnp.float32)

    # Logistic identity (exact for t in {0,1}, the only elements kept below):
    #   z = (1-2t)*x ; BCE = softplus(z) ; 1-pt = sigmoid(z)
    # Shares a single exp(-|z|) instead of exp -> log1p -> exp.
    z = (1.0 - 2.0 * t) * x
    e = jnp.exp(-jnp.abs(z))
    bce = jnp.maximum(z, 0.0) + jnp.log1p(e)
    inv = 1.0 / (1.0 + e)
    one_minus_pt = jnp.where(z >= 0.0, inv, e * inv)
    focal = _pow_static(one_minus_pt, gamma) * bce

    pos = t == 1.0
    neg = t == 0.0

    def _fold(v):
        # (block_rows, 128) -> (block_rows//8, 8, 128) -> sum over leading axis.
        # Pure VPU adds; no cross-lane (XLU) reduction.
        return jnp.sum(v.reshape(block_rows // SUBLANES, SUBLANES, LANES), axis=0)

    def _write(pos_m, neg_m):
        out_ref[0, 0] = _fold(jnp.where(pos_m, focal, 0.0))
        out_ref[0, 1] = _fold(pos_m.astype(jnp.float32))
        out_ref[0, 2] = _fold(jnp.where(neg_m, focal, 0.0))
        out_ref[0, 3] = _fold(neg_m.astype(jnp.float32))

    if tail_index is None:
        # Flat size is a multiple of the block size: every element is valid,
        # no masking anywhere.
        _write(pos, neg)
    else:
        is_tail = pl.program_id(0) == tail_index

        @pl.when(jnp.logical_not(is_tail))
        def _():
            _write(pos, neg)

        @pl.when(is_tail)
        def _():
            # Block-local index vs. trace-time remaining count: covers both the
            # zero-padded element tail and any ragged-grid garbage rows, and
            # cannot overflow int32 regardless of total size.
            row = jax.lax.broadcasted_iota(jnp.int32, (block_rows, LANES), 0)
            lane = jax.lax.broadcasted_iota(jnp.int32, (block_rows, LANES), 1)
            valid = row * LANES + lane < tail_remaining
            _write(jnp.logical_and(valid, pos), jnp.logical_and(valid, neg))


def _bce_kernel(x_ref, t_ref, o_ref):
    """batch==1 path: elementwise BCE only (generic formula, any float target)."""
    x = x_ref[...].astype(jnp.float32)
    t = t_ref[...].astype(jnp.float32)
    o_ref[...] = _bce_elementwise(x, t).astype(o_ref.dtype)


def focal_loss(inputs, targets, alpha=0.1, gamma=2.0, block_rows=None):
    """Pallas implementation of FocalLoss.forward."""
    orig_shape = inputs.shape
    batch = orig_shape[0]
    total = int(inputs.size)

    row_align = _row_align(inputs.dtype, targets.dtype)
    tile_elems = row_align * LANES
    padded = pl.cdiv(total, tile_elems) * tile_elems

    # Native dtype all the way into the kernel (upcast happens on load in VMEM).
    x = jnp.reshape(inputs, (-1,))
    t = jnp.reshape(targets, (-1,))
    if padded != total:
        x = jnp.pad(x, (0, padded - total))
        t = jnp.pad(t, (0, padded - total))

    m = padded // LANES
    x2 = x.reshape(m, LANES)
    t2 = t.reshape(m, LANES)

    if block_rows is None:
        block_rows = TARGET_BLOCK_ROWS
    block_rows = min(block_rows, m)
    # Keep >= 2 grid tiles when possible so the "parallel" axis feeds both
    # TensorCores on v7x (no effect on single-TC v5e/v6e).
    if block_rows >= m and m >= 2 * row_align:
        block_rows = m // 2
    block_rows = max(row_align, (block_rows // row_align) * row_align)
    num_tiles = pl.cdiv(m, block_rows)
    grid = (num_tiles,)

    in_specs = [
        pl.BlockSpec((block_rows, LANES), lambda i: (i, 0)),
        pl.BlockSpec((block_rows, LANES), lambda i: (i, 0)),
    ]

    if batch == 1:
        # PyTorch path: return the unreduced BCE loss, original shape & dtype.
        bce = pl.pallas_call(
            _bce_kernel,
            out_shape=jax.ShapeDtypeStruct((m, LANES), inputs.dtype),
            grid_spec=pltpu.PrefetchScalarGridSpec(
                num_scalar_prefetch=0,
                grid=grid,
                in_specs=in_specs,
                out_specs=pl.BlockSpec((block_rows, LANES), lambda i: (i, 0)),
            ),
            compiler_params=pltpu.CompilerParams(
                dimension_semantics=("parallel",)),
        )(x2, t2)
        if padded != total:
            return bce.reshape(-1)[:total].reshape(orig_shape)
        return bce.reshape(orig_shape)

    block_elems = block_rows * LANES
    has_tail = (total % block_elems) != 0
    tail_remaining = total - (num_tiles - 1) * block_elems

    kernel = functools.partial(
        _focal_reduce_kernel,
        gamma=float(gamma),
        block_rows=block_rows,
        tail_index=(num_tiles - 1) if has_tail else None,
        tail_remaining=tail_remaining,
    )

    # Tiny per-tile partials (num_tiles x 16 KiB); grid axis is independent
    # ("parallel") so v7x can split tiles across both TensorCores.
    partials = pl.pallas_call(
        kernel,
        out_shape=jax.ShapeDtypeStruct((num_tiles, 4, SUBLANES, LANES), jnp.float32),
        grid_spec=pltpu.PrefetchScalarGridSpec(
            num_scalar_prefetch=0,
            grid=grid,
            in_specs=in_specs,
            out_specs=pl.BlockSpec((1, 4, SUBLANES, LANES),
                                   lambda i: (i, 0, 0, 0)),
        ),
        compiler_params=pltpu.CompilerParams(
            dimension_semantics=("parallel",)),
    )(x2, t2)

    sums = jnp.sum(partials, axis=(0, 2, 3))   # (4,) f32
    alpha = float(alpha)
    # 0/0 -> NaN matches torch.mean of an empty slice.
    mean_pos = alpha * sums[0] / sums[1]
    mean_neg = (1.0 - alpha) * sums[2] / sums[3]
    return (mean_pos + mean_neg) * 0.5


def _focal_loss_ref(inputs, targets, alpha=0.1, gamma=2.0):
    """Pure-JAX reference mirroring the PyTorch module."""
    x = inputs.astype(jnp.float32)
    t = targets.astype(jnp.float32)
    bce = jnp.maximum(x, 0.0) - x * t + jnp.log1p(jnp.exp(-jnp.abs(x)))
    if inputs.shape[0] == 1:
        return bce
    pt = jnp.exp(-bce)
    focal = (1.0 - pt) ** gamma * bce
    pos = (t == 1.0)
    neg = (t == 0.0)
    mean_pos = jnp.sum(jnp.where(pos, alpha * focal, 0.0)) / jnp.sum(pos)
    mean_neg = jnp.sum(jnp.where(neg, (1.0 - alpha) * focal, 0.0)) / jnp.sum(neg)
    return (mean_pos + mean_neg) * 0.5


if __name__ == "__main__":
    key = jax.random.PRNGKey(0)
    k_x, k_t, k_x2, k_t2 = jax.random.split(key, 4)

    # NCHW logits / binary targets, small shapes: (B=2, C=4, H=16, W=16)
    x = jax.random.normal(k_x, (2, 4, 16, 16), dtype=jnp.float32)
    t = (jax.random.uniform(k_t, (2, 4, 16, 16)) > 0.7).astype(jnp.float32)

    out = jax.block_until_ready(focal_loss(x, t, alpha=0.1, gamma=2.0))
    ref = _focal_loss_ref(x, t, alpha=0.1, gamma=2.0)
    assert jnp.allclose(out, ref, atol=1e-5, rtol=1e-5), (out, ref)

    # batch==1 elementwise path (original shape & dtype).
    out1 = jax.block_until_ready(focal_loss(x[:1], t[:1], alpha=0.1, gamma=2.0))
    ref1 = _focal_loss_ref(x[:1], t[:1], alpha=0.1, gamma=2.0)
    assert out1.shape == (1, 4, 16, 16) and out1.dtype == x.dtype
    assert jnp.allclose(out1, ref1, atol=1e-5, rtol=1e-5)

    # Odd size (not tile-aligned) -> exercises pad + tail-only in-kernel mask.
    x3 = jax.random.normal(k_x2, (2, 3, 19, 23), dtype=jnp.float32)
    t3 = (jax.random.uniform(k_t2, (2, 3, 19, 23)) > 0.5).astype(jnp.float32)
    out3 = jax.block_until_ready(focal_loss(x3, t3, alpha=0.25, gamma=2.0))
    ref3 = _focal_loss_ref(x3, t3, alpha=0.25, gamma=2.0)
    assert jnp.allclose(out3, ref3, atol=1e-5, rtol=1e-5), (out3, ref3)

    # Ragged grid (last block partially out of bounds) via a forced small block.
    out4 = jax.block_until_ready(focal_loss(x3, t3, alpha=0.25, gamma=2.0,
                                            block_rows=16))
    assert jnp.allclose(out4, ref3, atol=1e-5, rtol=1e-5), (out4, ref3)

    # bf16 logits streamed natively (no wrapper upcast pass).
    xb = x.astype(jnp.bfloat16)
    outb = jax.block_until_ready(focal_loss(xb, t, alpha=0.1, gamma=2.0))
    refb = _focal_loss_ref(xb.astype(jnp.float32), t, alpha=0.1, gamma=2.0)
    assert jnp.allclose(outb, refb, atol=5e-3, rtol=5e-3), (outb, refb)

    print("KERNEL_OK")
</pallas_src>

<mosaic_0001>
module attributes {stable_mosaic.version = 11 : i64} {
  func.func @_focal_reduce_kernel(%arg0: i32, %arg1: memref<8x128xf32, #tpu.memory_space<vmem>>, %arg2: memref<8x128xf32, #tpu.memory_space<vmem>>, %arg3: memref<1x4x8x128xf32, #tpu.memory_space<vmem>>) attributes {dimension_semantics = [#tpu.dimension_semantics<parallel>], iteration_bounds = array<i64: 2>, scalar_prefetch = 0 : i64, scratch_operands = 0 : i64, tpu.core_type = #tpu.core_type<tc>, window_params = [{transform_indices = @transform_0, window_bounds = array<i64: 8, 128>}, {transform_indices = @transform_1, window_bounds = array<i64: 8, 128>}, {transform_indices = @transform_2, window_bounds = array<i64: 1, 4, 8, 128>}]} {
    %c0 = arith.constant 0 : index
    %c0_0 = arith.constant 0 : index
    %0 = vector.load %arg1[%c0, %c0_0] : memref<8x128xf32, #tpu.memory_space<vmem>>, vector<8x128xf32>
    %c0_1 = arith.constant 0 : index
    %c0_2 = arith.constant 0 : index
    %1 = vector.load %arg2[%c0_1, %c0_2] : memref<8x128xf32, #tpu.memory_space<vmem>>, vector<8x128xf32>
    %cst = arith.constant 2.000000e+00 : f32
    %2 = vector.broadcast %cst : f32 to vector<8x128xf32>
    %3 = arith.mulf %2, %1 : vector<8x128xf32>
    %cst_3 = arith.constant 1.000000e+00 : f32
    %4 = vector.broadcast %cst_3 : f32 to vector<8x128xf32>
    %5 = arith.subf %4, %3 : vector<8x128xf32>
    %6 = arith.mulf %5, %0 : vector<8x128xf32>
    %7 = math.absf %6 : vector<8x128xf32>
    %cst_4 = arith.constant 0.000000e+00 : f32
    %8 = vector.broadcast %cst_4 : f32 to vector<8x128xf32>
    %9 = arith.subf %8, %7 : vector<8x128xf32>
    %10 = math.exp %9 : vector<8x128xf32>
    %cst_5 = arith.constant 0.000000e+00 : f32
    %11 = vector.broadcast %cst_5 : f32 to vector<8x128xf32>
    %12 = arith.maximumf %6, %11 : vector<8x128xf32>
    %13 = math.log1p %10 : vector<8x128xf32>
    %14 = arith.addf %12, %13 : vector<8x128xf32>
    %cst_6 = arith.constant 1.000000e+00 : f32
    %15 = vector.broadcast %cst_6 : f32 to vector<8x128xf32>
    %16 = arith.addf %15, %10 : vector<8x128xf32>
    %cst_7 = arith.constant 1.000000e+00 : f32
    %17 = vector.broadcast %cst_7 : f32 to vector<8x128xf32>
    %18 = arith.divf %17, %16 : vector<8x128xf32>
    %cst_8 = arith.constant 0.000000e+00 : f32
    %19 = vector.broadcast %cst_8 : f32 to vector<8x128xf32>
    %20 = arith.cmpf oge, %6, %19 : vector<8x128xf32>
    %21 = arith.mulf %10, %18 : vector<8x128xf32>
    %22 = arith.select %20, %18, %21 : vector<8x128xi1>, vector<8x128xf32>
    %23 = arith.mulf %22, %22 : vector<8x128xf32>
    %24 = arith.mulf %23, %14 : vector<8x128xf32>
    %cst_9 = arith.constant 1.000000e+00 : f32
    %25 = vector.broadcast %cst_9 : f32 to vector<8x128xf32>
    %26 = arith.cmpf oeq, %1, %25 : vector<8x128xf32>
    %cst_10 = arith.constant 0.000000e+00 : f32
    %27 = vector.broadcast %cst_10 : f32 to vector<8x128xf32>
    %28 = arith.cmpf oeq, %1, %27 : vector<8x128xf32>
    %cst_11 = arith.constant 0.000000e+00 : f32
    %29 = vector.broadcast %cst_11 : f32 to vector<8x128xf32>
    %30 = arith.select %26, %24, %29 : vector<8x128xi1>, vector<8x128xf32>
    %31 = vector.shape_cast %30 : vector<8x128xf32> to vector<1x8x128xf32>
    %cst_12 = arith.constant dense<0.000000e+00> : vector<8x128xf32>
    %32 = vector.multi_reduction <add>, %31, %cst_12 [0] : vector<1x8x128xf32> to vector<8x128xf32>
    %c0_13 = arith.constant 0 : index
    %c0_14 = arith.constant 0 : index
    %c0_15 = arith.constant 0 : index
    %c0_16 = arith.constant 0 : index
    %33 = vector.load %arg3[%c0_13, %c0_14, %c0_15, %c0_16] : memref<1x4x8x128xf32, #tpu.memory_space<vmem>>, vector<1x1x8x128xf32>
    %34 = vector.shape_cast %33 : vector<1x1x8x128xf32> to vector<8x128xf32>
    %35 = vector.shape_cast %32 : vector<8x128xf32> to vector<1x1x8x128xf32>
    tpu.vector_store %arg3[%c0_13, %c0_14, %c0_15, %c0_16], %35 {strides = array<i32>} : memref<1x4x8x128xf32, #tpu.memory_space<vmem>>, vector<1x1x8x128xf32>,
    %36 = arith.extui %26 : vector<8x128xi1> to vector<8x128xi32>
    %37 = arith.sitofp %36 : vector<8x128xi32> to vector<8x128xf32>
    %38 = vector.shape_cast %37 : vector<8x128xf32> to vector<1x8x128xf32>
    %cst_17 = arith.constant dense<0.000000e+00> : vector<8x128xf32>
    %39 = vector.multi_reduction <add>, %38, %cst_17 [0] : vector<1x8x128xf32> to vector<8x128xf32>
    %c0_18 = arith.constant 0 : index
    %c1 = arith.constant 1 : index
    %c0_19 = arith.constant 0 : index
    %c0_20 = arith.constant 0 : index
    %40 = vector.load %arg3[%c0_18, %c1, %c0_19, %c0_20] : memref<1x4x8x128xf32, #tpu.memory_space<vmem>>, vector<1x1x8x128xf32>
    %41 = vector.shape_cast %40 : vector<1x1x8x128xf32> to vector<8x128xf32>
    %42 = vector.shape_cast %39 : vector<8x128xf32> to vector<1x1x8x128xf32>
    tpu.vector_store %arg3[%c0_18, %c1, %c0_19, %c0_20], %42 {strides = array<i32>} : memref<1x4x8x128xf32, #tpu.memory_space<vmem>>, vector<1x1x8x128xf32>,
    %cst_21 = arith.constant 0.000000e+00 : f32
    %43 = vector.broadcast %cst_21 : f32 to vector<8x128xf32>
    %44 = arith.select %28, %24, %43 : vector<8x128xi1>, vector<8x128xf32>
    %45 = vector.shape_cast %44 : vector<8x128xf32> to vector<1x8x128xf32>
    %cst_22 = arith.constant dense<0.000000e+00> : vector<8x128xf32>
    %46 = vector.multi_reduction <add>, %45, %cst_22 [0] : vector<1x8x128xf32> to vector<8x128xf32>
    %c0_23 = arith.constant 0 : index
    %c2 = arith.constant 2 : index
    %c0_24 = arith.constant 0 : index
    %c0_25 = arith.constant 0 : index
    %47 = vector.load %arg3[%c0_23, %c2, %c0_24, %c0_25] : memref<1x4x8x128xf32, #tpu.memory_space<vmem>>, vector<1x1x8x128xf32>
    %48 = vector.shape_cast %47 : vector<1x1x8x128xf32> to vector<8x128xf32>
    %49 = vector.shape_cast %46 : vector<8x128xf32> to vector<1x1x8x128xf32>
    tpu.vector_store %arg3[%c0_23, %c2, %c0_24, %c0_25], %49 {strides = array<i32>} : memref<1x4x8x128xf32, #tpu.memory_space<vmem>>, vector<1x1x8x128xf32>,
    %50 = arith.extui %28 : vector<8x128xi1> to vector<8x128xi32>
    %51 = arith.sitofp %50 : vector<8x128xi32> to vector<8x128xf32>
    %52 = vector.shape_cast %51 : vector<8x128xf32> to vector<1x8x128xf32>
    %cst_26 = arith.constant dense<0.000000e+00> : vector<8x128xf32>
    %53 = vector.multi_reduction <add>, %52, %cst_26 [0] : vector<1x8x128xf32> to vector<8x128xf32>
    %c0_27 = arith.constant 0 : index
    %c3 = arith.constant 3 : index
    %c0_28 = arith.constant 0 : index
    %c0_29 = arith.constant 0 : index
    %54 = vector.load %arg3[%c0_27, %c3, %c0_28, %c0_29] : memref<1x4x8x128xf32, #tpu.memory_space<vmem>>, vector<1x1x8x128xf32>
    %55 = vector.shape_cast %54 : vector<1x1x8x128xf32> to vector<8x128xf32>
    %56 = vector.shape_cast %53 : vector<8x128xf32> to vector<1x1x8x128xf32>
    tpu.vector_store %arg3[%c0_27, %c3, %c0_28, %c0_29], %56 {strides = array<i32>} : memref<1x4x8x128xf32, #tpu.memory_space<vmem>>, vector<1x1x8x128xf32>,
    return
  }
  func.func @transform_0(%arg0: i32) -> (i32, i32) {
    %c0_i32 = arith.constant 0 : i32
    %c0_i32_0 = arith.constant 0 : i32
    return %arg0, %c0_i32 : i32, i32
  }
  func.func @transform_1(%arg0: i32) -> (i32, i32) {
    %c0_i32 = arith.constant 0 : i32
    %c0_i32_0 = arith.constant 0 : i32
    return %arg0, %c0_i32 : i32, i32
  }
  func.func @transform_2(%arg0: i32) -> (i32, i32, i32, i32) {
    %c0_i32 = arith.constant 0 : i32
    %c0_i32_0 = arith.constant 0 : i32
    %c0_i32_1 = arith.constant 0 : i32
    %c0_i32_2 = arith.constant 0 : i32
    return %arg0, %c0_i32, %c0_i32_0, %c0_i32_1 : i32, i32, i32, i32
  }
}

</mosaic_0001>

<bundles_post_ra>
// kernel: tpu_custom_call.1
= control target key start
LH: loop header
LB: loop body
LE: loop exit
PB: predicated region body
PF: predicated region fallthrough
CT: control target
= control target key end

     0   :  { %7 = vsyncpa [#allocation3], 0  ;;  %s802_s0 = inlined_call_operand.hbm [shape: f32[16,128], index: 0, kind: input, shape index: {}]   ;;  %s803_s1 = inlined_call_operand.hbm [shape: f32[16,128], index: 1, kind: input, shape index: {}]   ;;  %s804_s2 = inlined_call_operand.hbm [shape: f32[2,4,8,128], index: 2, kind: output, shape index: {}]  }
   0x1   :  { %9 = vsyncpa [#allocation3 + $0x1], 0 }
   0x2   :  { %10 = vsyncpa [#allocation6], 0 }
   0x3   :  { %12 = vsyncpa [#allocation6 + $0x1], 0 }
   0x4   :  { %13 = vsyncpa [#allocation4], 0 }
   0x5   :  { %15 = vsyncpa [#allocation4 + $0x1], 0  ;;  %s582_s9 = smov 0   ;;  %s584_s10 = smov 0  }
   0x6   :  { %s586_s11 = smov 0   ;;  %s588_s12 = smov 0  }
   0x7 LB: > { %s603_s13 = sadd.s32 4294967295, %s559_s12   ;;  %s353_s14 = sadd.s32 4294967294, %s559_s12   ;;  %s559_s12 = sphi %s588_s12, %s823_s12   ;;  %s555_s11 = sphi %s586_s11, %s822_s11   ;;  %s551_s10 = sphi %s584_s10, %s821_s10   ;;  %s547_s9 = sphi %s582_s9, %s820_s9  }
   0x8   : > { %s607_s15 = sadd.s32 1, %s559_s12   ;;  %s28_s16 = sadd.s32 1, %s555_s11 }
   0x9   : > { %s25_s17 = ssub.s32 %s559_s12, %s607_s15  ;;  %p35_p0 = scmp.ne.s32.totalorder %s555_s11, %s551_s10 }
   0xa   : > { %p26_p1 = scmp.eq.s32.totalorder %s25_s17, 0  ;;  %p36_p2 = scmp.eq.s32.totalorder %s559_s12, 0 }
   0xb   : > { %p41_p3 = scmp.ne.s32.totalorder %s551_s10, %s547_s9  ;;  %p42_p4 = scmp.eq.s32.totalorder %s603_s13, 0 }
   0xc   : > { %s619_s18 = scalar_select %p26_p1, %s555_s11, %s28_s16  }
   0xd   : > { %p621_p5 = por %p36_p2, %p35_p0  ;;  %p625_p6 = por %p42_p4, %p41_p3 }
   0xe   : > { %p91_p7 = scmp.eq.s32.totalorder %s603_s13, 1  ;;  %p97_p8 = scmp.eq.s32.totalorder %s353_s14, 1 }
   0xf   : > { %s808_s20 = scalar_select %p625_p6, 1, 0 }
  0x10   : > { %p392_p10 = scmp.lt.s32.totalorder %s559_s12, 2  ;;  %p632_p11 = por %p91_p7, %p35_p0 }
  0x11   : > { %p636_p12 = por %p97_p8, %p41_p3  ;;  %s641_s23 = sand.u32 1, %s555_s11  }
  0x12   : > { %s809_s21 = scalar_select %p632_p11, 1, 0 }
  0x13   : > { %s810_s22 = scalar_select %p636_p12, 1, 0 }
  0x14   : > { %s357_s24 = sshll.u32 %s559_s12, 7  ;;  %s356_s25 = sshll.u32 %s641_s23, 3 }
  0x15   : > { %s650_s28 = scalar_lea.hbm %s802_s0, %s357_s24  ;;  %s121_s29 = scalar_lea.vmem [#allocation2], %s356_s25 }
  0x16   : > { %s128_s30 = sshll.u32 %s121_s29, 4  ;;  %p656_p13 = pnand %p392_p10, %p621_p5  ;;  %s660_s30 = int_to_ptr.vmem [resolvable:$true] %s128_s30 }
  0x17   : > { %s118_s4 = scalar_lea.sflag [#allocation3], %s641_s23  ;;  %s435_s5 = scalar_lea.hbm %s650_s28, 128 }
  0x18   : > { %p436_p2 = scmp.ne.s32.totalorder %s650_s28, %s435_s5  ;;  %p437_p3 = pneg %p656_p13 }
  0x19   : > { %s440_s8 = scalar_lea.hbm %s802_s0, 256  ;;  %p441_p5 = scmp.lt.s32.totalorder %s650_s28, %s802_s0 }
  0x1a   : > { %p438_p4 = pnand %p437_p3, %p436_p2  ;;  %p442_p8 = scmp.lt.s32.totalorder %s440_s8, %s435_s5 }
  0x1c   : > { %p439_p7 = pneg %p438_p4  ;;  %p443_p10 = por %p442_p8, %p441_p5 }
  0x1e   : > { %p444_p9 = pnand %p443_p10, %p439_p7 }
  0x20   : > { %447 = shalt.err (!%p444_p9)
}
  0x21   : > { %s448_s17 = scalar_lea.vmem %s660_s30, 128  ;;  %s561_s19 = smov [#allocation2]  }
  0x22   : > { %p449_p0 = scmp.ne.s32.totalorder %s660_s30, %s448_s17  ;;  %s453_s26 = sshll.u32 %s561_s19, 4  ;;  %s454_s26 = int_to_ptr.vmem [resolvable:$false] %s453_s26 }
  0x23   : > { %s455_s27 = scalar_lea.vmem %s454_s26, 256  ;;  %p456_p1 = scmp.lt.s32.totalorder %s660_s30, %s454_s26 }
  0x24   : > { %p451_p2 = pnand %p449_p0, %p437_p3  ;;  %p457_p12 = scmp.lt.s32.totalorder %s455_s27, %s448_s17 }
  0x26   : > { %p452_p4 = pneg %p451_p2  ;;  %p458_p11 = por %p457_p12, %p456_p1 }
  0x28   : > { %p459_p5 = pnand %p458_p11, %p452_p4 }
  0x2a   : > { %462 = shalt.err (!%p459_p5)
}
  0x2b   : > { %384 = dma.hbm_to_vmem [thread:$0]  (!%p656_p13), %s650_s28, 128, %s660_s30, %s118_s4  }
  0x2c   : > { %p812_p9 = scmp.lt.s32.totalorder %s559_s12, 3  ;;  %p813_p0 = scmp.ge.s32.totalorder %s559_s12, 1 }
  0x2d   : > { %s702_s7 = scalar_lea.hbm %s803_s1, %s357_s24  ;;  %s139_s8 = scalar_lea.vmem [#allocation5], %s356_s25 }
  0x2e   : > { %p693_p7 = pnand %p813_p0, %p812_p9  ;;  %s146_s14 = sshll.u32 %s139_s8, 4  ;;  %s147_s14 = int_to_ptr.vmem [resolvable:$true] %s146_s14 }
  0x2f   : > { %s136_s28 = scalar_lea.sflag [#allocation6], %s641_s23  ;;  %s463_s30 = scalar_lea.hbm %s702_s7, 128 }
  0x30   : > { %s814_s29 = scalar_select %p693_p7, 1, 0 }
  0x31   : > { %p464_p11 = scmp.ne.s32.totalorder %s702_s7, %s463_s30  ;;  %s468_s17 = scalar_lea.hbm %s803_s1, 256 }
  0x32   : > { %p469_p8 = scmp.lt.s32.totalorder %s702_s7, %s803_s1  ;;  %p470_p10 = scmp.lt.s32.totalorder %s468_s17, %s463_s30 }
  0x33   : > { %p466_p12 = pnand %p464_p11, %p437_p3 }
  0x34   : > { %p471_p2 = por %p470_p10, %p469_p8 }
  0x35   : > { %p467_p1 = pneg %p466_p12 }
  0x37   : > { %p472_p4 = pnand %p471_p2, %p467_p1 }
  0x39   : > { %475 = shalt.err (!%p472_p4)
}
  0x3a   : > { %s476_s25 = scalar_lea.vmem %s147_s14, 128  ;;  %s562_s23 = smov [#allocation5]  }
  0x3b   : > { %p477_p5 = scmp.ne.s32.totalorder %s147_s14, %s476_s25  ;;  %s481_s26 = sshll.u32 %s562_s23, 4  ;;  %s482_s26 = int_to_ptr.vmem [resolvable:$false] %s481_s26 }
  0x3c   : > { %s483_s27 = scalar_lea.vmem %s482_s26, 256  ;;  %p484_p11 = scmp.lt.s32.totalorder %s147_s14, %s482_s26 }
  0x3d   : > { %p479_p9 = pnand %p477_p5, %p437_p3  ;;  %p485_p12 = scmp.lt.s32.totalorder %s483_s27, %s476_s25 }
  0x3f   : > { %p480_p0 = pneg %p479_p9  ;;  %p486_p6 = por %p485_p12, %p484_p11 }
  0x41   : > { %p487_p7 = pnand %p486_p6, %p480_p0 }
  0x43   : > { %490 = shalt.err (!%p487_p7)
}
  0x44   : > { %387 = dma.hbm_to_vmem [thread:$0]  (!%p656_p13), %s702_s7, 128, %s147_s14, %s136_s28  }
  0x45   : > { %p815_p1 = scmp.ne.s32.totalorder %s814_s29, 0 }
  0x46   : > { %s728_s5 = sand.u32 (!%p815_p1), 1, %s551_s10   ;;  %p816_p3 = scmp.ne.s32.totalorder (!%p815_p1), %s808_s20, 0 }
  0x47   : > { %155 = sbr.rel (%p815_p1) target bundleno = 145 (0x91), region = 28  ;;  %s361_s6 = sshll.u32 (!%p815_p1), %s728_s5, 3 }
  0x48   : > { %s158_s8 = scalar_lea.sflag (!%p815_p1), [#allocation3], %s728_s5  ;;  %s161_s30 = scalar_lea.vmem (!%p815_p1), [#allocation2], %s361_s6 }
  0x4c   : > { %534 = dma.done.wait (%p816_p3), %s158_s8, 128  }
  0x4d   : > { %536 = vsyncadd (%p816_p3), %s158_s8, 4294967168  ;;  %s167_s3 = scalar_lea.sflag [#allocation6], %s728_s5  ;;  %s170_s7 = scalar_lea.vmem [#allocation5], %s361_s6 }
  0x4e   : > { %538 = dma.done.wait (%p816_p3), %s167_s3, 128  }
  0x4f   : > { %540 = vsyncadd (%p816_p3), %s167_s3, 4294967168  ;;  %s363_s29 = sshll.u32 %s728_s5, 5  ;;  %v197_v0 = vld [vmem:[%s170_s7] sm:$0xff]  ;;  %v196_v2 = vld [vmem:[%s161_s30] sm:$0xff]  ;;  %v563_v3 = vmov 0.0   ;;  %s374_s28 = sshll.u32 %s603_s13, 9 }
  0x50   : > { %v198_v1 = vmul.f32 2.0, %v197_v0  ;;  %vm224_vm0 = vcmp.eq.f32.partialorder %v197_v0, 1.0  ;;  %vm225_vm1 = vcmp.eq.f32.partialorder %v197_v0, 0.0  ;;  %s744_s14 = scalar_lea.vmem [#allocation7], %s363_s29  ;;  %s755_s17 = scalar_lea.hbm %s804_s2, %s374_s28 }
  0x51   : > { %v364_v4 = vsel %vm224_vm0, 1.0, %v563_v3  ;;  %v367_v5 = vsel %vm225_vm1, 1.0, %v563_v3  ;;  %s257_s20 = sshll.u32 %s744_s14, 4  ;;  %s244_s24 = scalar_lea.sflag [#allocation4], %s728_s5  ;;  %s750_s20 = int_to_ptr.vmem [resolvable:$true] %s257_s20 }
  0x52   : > { %v199_v6 = vsub.f32 1.0, %v198_v1  ;;  %365 = vst [vmem:[%s744_s14 + $0x8] sm:$0xff] %v364_v4  ;;  %368 = vst [vmem:[%s744_s14 + $0x18] sm:$0xff] %v367_v5  ;;  %s491_s13 = scalar_lea.vmem %s750_s20, 512  ;;  %p817_p13 = scmp.ne.s32.totalorder %s809_s21, 0 }
  0x53   : > { %p492_p6 = scmp.ne.s32.totalorder %s750_s20, %s491_s13  ;;  %s564_s19 = smov [#allocation7]  }
  0x54   : > { %v200_v7 = vmul.f32 %v199_v6, %v196_v2  ;;  %s495_s25 = sshll.u32 %s564_s19, 4  ;;  %s496_s25 = int_to_ptr.vmem [resolvable:$false] %s495_s25 }
  0x55   : > { %p493_p7 = pnand %p492_p6, %p817_p13  ;;  %s497_s23 = scalar_lea.vmem %s496_s25, 1024 }
  0x56   : > { %v201_v8 = vand.u32 2147483647, %v200_v7  ;;  %v205_v18 = vmax.f32 %v200_v7, 0.0  ;;  %vm219_vm3 = vcmp.ge.f32.partialorder %v200_v7, 0.0  ;;  %p498_p10 = scmp.lt.s32.totalorder %s750_s20, %s496_s25  ;;  %p499_p2 = scmp.lt.s32.totalorder %s497_s23, %s491_s13 }
  0x57   : > { %p494_p8 = pneg %p493_p7 }
  0x58   : > { %v202_v9 = vsub.f32 0.0, %v201_v8  ;;  %p500_p4 = por %p499_p2, %p498_p10 }
  0x5a   : > { %v203_v10 = vmul.f32 1.442695, %v202_v9  ;;  %p501_p5 = pnand %p500_p4, %p494_p8 }
  0x5c   : > { %429 = vpow2.f32 %v203_v10 }
  0x69   : > { %v430_v11 = vpop.eup %429 }
  0x6a   : > { %v206_v12 = vadd.f32 1.0, %v430_v11  ;;  %v209_v13 = vmul.f32 -0.5, %v430_v11  ;;  %v212_v15 = vand.u32 2147483647, %v430_v11 }
  0x6c   : > { %431 = vlog2.f32 %v206_v12  ;;  %v210_v14 = vadd.f32 1.0, %v209_v13  ;;  %vm213_vm2 = vcmp.lt.f32.partialorder %v212_v15, 0.0004427343 }
  0x6d   : > { %433 = vrcp.f32 %v206_v12 }
  0x6e   : > { %v211_v16 = vmul.f32 %v430_v11, %v210_v14 }
  0x79   : > { %v432_v17 = vpop.eup %431 }
  0x7a   : > { %v434_v19 = vpop.eup %433  ;;  %v208_v20 = vmul.f32 0.6931472, %v432_v17 }
  0x7b   : > { %v220_v21 = vmul.f32 %v434_v19, %v430_v11 }
  0x7c   : > { %v214_v22 = vsel %vm213_vm2, %v211_v16, %v208_v20 }
  0x7d   : > { %v215_v23 = vadd.f32 %v214_v22, %v205_v18  ;;  %v221_v24 = vsel %vm219_vm3, %v434_v19, %v220_v21 }
  0x7e   : > { %v222_v25 = vmul.f32 %v221_v24, %v221_v24 }
  0x80   : > { %v223_v26 = vmul.f32 %v222_v25, %v215_v23 }
  0x82   : > { %v226_v27 = vsel %vm224_vm0, %v223_v26, 0.0  ;;  %v234_v28 = vsel %vm225_vm1, %v223_v26, 0.0 }
  0x83   : > { %228 = vst [vmem:[%s744_s14] sm:$0xff] %v226_v27  ;;  %366 = vst [vmem:[%s744_s14 + $0x10] sm:$0xff] %v234_v28 }
  0x84   : > { %504 = shalt.err (!%p501_p5)
}
  0x85   : > { %s505_s26 = scalar_lea.hbm %s755_s17, 512  ;;  %s509_s8 = scalar_lea.hbm %s804_s2, 1024 }
  0x86   : > { %p506_p9 = scmp.ne.s32.totalorder %s755_s17, %s505_s26  ;;  %p510_p12 = scmp.lt.s32.totalorder %s755_s17, %s804_s2 }
  0x87   : > { %p511_p1 = scmp.lt.s32.totalorder %s509_s8, %s505_s26 }
  0x88   : > { %p507_p0 = pnand %p506_p9, %p817_p13 }
  0x89   : > { %p512_p3 = por %p511_p1, %p510_p12 }
  0x8a   : > { %p508_p11 = pneg %p507_p0 }
  0x8c   : > { %p513_p6 = pnand %p512_p3, %p508_p11 }
  0x8e   : > { %516 = shalt.err (!%p513_p6)
}
  0x8f   : > { %s565_s7 = smov 128   ;;  %s566_s29 = smov 8  }
  0x90   : > { %379 = dma.vmem_to_hbm [thread:$0]  (%p817_p13), %s750_s20, 512, %s755_s17, %s244_s24, %s565_s7, %s565_s7, %s566_s29  }
  0x91 PF: > { %s272_s14 = sand.u32 1, %s547_s9   ;;  %p818_p7 = scmp.ne.s32.totalorder %s810_s22, 0 }
  0x92   : > { %p819_p8 = scmp.ge.s32.totalorder %s559_s12, 2  ;;  %s273_s28 = scalar_lea.sflag [#allocation4], %s272_s14 }
  0x94   : > { %p389_p10 = pnand %p819_p8, %p818_p7 }
  0x96   : > { %p390_p2 = pneg %p389_p10 }
  0x98   : > { %542 = dma.done.wait (%p390_p2), %s273_s28, 512  }
  0x99   : > { %544 = vsyncadd (%p390_p2), %s273_s28, 4294966784  ;;  %p18_p4 = scmp.ge.s32.totalorder %s607_s15, 4   ;;  %s820_s9 = smov %s551_s10 }
  0x9a   : > { %s821_s10 = smov %s555_s11  ;;  %s822_s11 = smov %s619_s18 }
  0x9b   : > { %s823_s12 = smov %s607_s15  ;;  %20 = sbr.rel (!%p18_p4) target bundleno = 7 (0x7), region = 89 }
  0xa0   :  { %278 = vsyncpa [#allocation3], 1 }
  0xa1   :  { %280 = vsyncpa [#allocation3 + $0x1], 1 }
  0xa2   :  { %281 = vsyncpa [#allocation6], 1 }
  0xa3   :  { %283 = vsyncpa [#allocation6 + $0x1], 1 }
  0xa4   :  { %284 = vsyncpa [#allocation4], 1 }
  0xa5   :  { %286 = vsyncpa [#allocation4 + $0x1], 1 }

</bundles_post_ra>
